<compile_context>
chip_gen: v5e
topology: v5e:2x2
jax: 0.10.0
libtpu: 0.0.40
codegen_flags: <defaults>
</compile_context>

<pallas_src>
import jax
import jax.numpy as jnp
from jax.experimental import pallas as pl
from jax.experimental.pallas import tpu as pltpu


def _make_ln2d_kernel(eps: float):
    def ln2d_kernel(x_ref, w_ref, b_ref, o_ref):
        # 2-D path: x_ref (Rt, HW), w_ref/b_ref (Rt, 1)
        # 3-D path: x_ref (1, C, HW), w_ref/b_ref (1, C, 1)
        x = x_ref[...]
        xf = x.astype(jnp.float32)
        hw = xf.shape[-1]
        inv_hw = 1.0 / float(hw)  # multiply by constant, never a per-element divide

        # Two-pass (mean, then centered-square) variance: matches torch numerics and avoids
        # catastrophic cancellation of the E[x^2] - mean^2 form for large-mean inputs.
        mean = jnp.sum(xf, axis=-1, keepdims=True) * inv_hw
        centered = xf - mean
        var = jnp.sum(centered * centered, axis=-1, keepdims=True) * inv_hw  # unbiased=False
        std = jnp.maximum(jnp.sqrt(var + eps), 0.001)  # torch.clamp(std, min=0.001)

        # Fold normalization + affine into per-row scale/shift so the per-element epilogue is
        # a single mul + add.  The divide only touches the row-count-length vector.
        inv_std = 1.0 / std
        w = w_ref[...].astype(jnp.float32)
        b = b_ref[...].astype(jnp.float32)
        scale = w * inv_std
        shift = b - mean * scale

        if x.dtype == jnp.float32:
            out = xf * scale + shift
        else:
            # bf16/f16 inputs: reductions stay in f32, but the large elementwise epilogue
            # runs in the input dtype (halves vreg/VPU traffic for the tile).
            out = x * scale.astype(x.dtype) + shift.astype(x.dtype)
        o_ref[...] = out.astype(o_ref.dtype)

    return ln2d_kernel


def _pick_row_tile(rows: int, hw: int, itemsize: int) -> int:
    """Largest row tile (multiple of 8, dividing `rows`) with x-tile <= ~2 MiB.

    Input and output blocks are each double-buffered, so ~4 x-sized tiles are live at once;
    ~2 MiB tiles keep pipeline VMEM around 8 MiB — inside v5e's 16 MiB default scoped VMEM
    and comfortably inside v6e/v7x — while still large enough to amortize the ~0.35 us
    per-grid-step overhead.
    """
    target_bytes = 2 * 1024 * 1024
    max_tile = (target_bytes // max(1, hw * itemsize)) // 8 * 8
    max_tile = max(8, min(rows, max_tile))
    for t in range(max_tile, 7, -8):
        if rows % t == 0:
            return t
    return 8  # unreachable when rows % 8 == 0


def layer_norm_2d(x, weight, bias, eps=1e-6):
    """x: (N, C, H, W); weight, bias: (1, C, 1, 1). Returns (N, C, H, W)."""
    N, C, H, W = x.shape
    HW = H * W
    R = N * C
    itemsize = jnp.dtype(x.dtype).itemsize
    kernel = _make_ln2d_kernel(eps)

    # TODO(synk): if HW is not a multiple of 128 the output stores become masked (vst.msk)
    # and slower; a lane-padding fast path would need in-kernel masking of the reductions.
    # Correctness is unaffected since each block spans the full HW extent.

    if R % 8 == 0:
        # Preferred 2-D path: sublane-aligned row tiles over the fused (N*C) axis.
        x2 = x.reshape(R, HW)
        w_rows = jnp.tile(weight.reshape(C), N).reshape(R, 1)
        b_rows = jnp.tile(bias.reshape(C), N).reshape(R, 1)
        rt = _pick_row_tile(R, HW, itemsize)
        out2 = pl.pallas_call(
            kernel,
            out_shape=jax.ShapeDtypeStruct((R, HW), x.dtype),
            grid_spec=pltpu.PrefetchScalarGridSpec(
                num_scalar_prefetch=0,
                grid=(R // rt,),
                in_specs=[
                    pl.BlockSpec((rt, HW), lambda i: (i, 0)),  # x rows
                    pl.BlockSpec((rt, 1), lambda i: (i, 0)),   # per-row weight
                    pl.BlockSpec((rt, 1), lambda i: (i, 0)),   # per-row bias
                ],
                out_specs=pl.BlockSpec((rt, HW), lambda i: (i, 0)),
            ),
            compiler_params=pltpu.CompilerParams(
                # Every grid step is independent — lets the runtime shard steps across both
                # TensorCores (v7x / megacore).
                dimension_semantics=("parallel",),
            ),
        )(x2, w_rows, b_rows)
        out = out2.reshape(N, C, H, W)
    else:
        # Fallback for ragged N*C: one sample per grid step, block spans the full (C, HW).
        x3 = x.reshape(N, C, HW)
        w3 = weight.reshape(1, C, 1)
        b3 = bias.reshape(1, C, 1)
        out3 = pl.pallas_call(
            kernel,
            out_shape=jax.ShapeDtypeStruct((N, C, HW), x.dtype),
            grid_spec=pltpu.PrefetchScalarGridSpec(
                num_scalar_prefetch=0,
                grid=(N,),
                in_specs=[
                    pl.BlockSpec((1, C, HW), lambda n: (n, 0, 0)),
                    pl.BlockSpec((1, C, 1), lambda n: (0, 0, 0)),
                    pl.BlockSpec((1, C, 1), lambda n: (0, 0, 0)),
                ],
                out_specs=pl.BlockSpec((1, C, HW), lambda n: (n, 0, 0)),
            ),
            compiler_params=pltpu.CompilerParams(
                dimension_semantics=("parallel",),
            ),
        )(x3, w3, b3)
        out = out3.reshape(N, C, H, W)

    # TODO(synk): torch.isnan(out).any() + host-side print has no clean in-kernel
    # equivalent (would require a host callback); omitted.
    return out


def layer_norm_2d_ref(x, weight, bias, eps=1e-6):
    mean = jnp.mean(x, axis=(2, 3), keepdims=True)
    var = jnp.mean((x - mean) ** 2, axis=(2, 3), keepdims=True)
    std = jnp.sqrt(var + eps)
    std = jnp.maximum(std, 0.001)
    return (x - mean) / std * weight + bias


if __name__ == "__main__":
    key = jax.random.PRNGKey(0)
    N, C, H, W = 2, 4, 16, 16

    x = jax.random.normal(key, (N, C, H, W), dtype=jnp.float32)
    # Deterministic parameter init matching nn.Parameter(torch.ones/zeros(1, C, 1, 1))
    weight = jnp.ones((1, C, 1, 1), dtype=jnp.float32)
    bias = jnp.zeros((1, C, 1, 1), dtype=jnp.float32)

    out = layer_norm_2d(x, weight, bias, eps=1e-6)
    out = jax.block_until_ready(out)

    ref = layer_norm_2d_ref(x, weight, bias, eps=1e-6)
    assert out.shape == (N, C, H, W)
    assert jnp.allclose(out, ref, atol=1e-5, rtol=1e-5), "mismatch vs reference"

    print("KERNEL_OK")
</pallas_src>

<mosaic_0001>
module attributes {stable_mosaic.version = 11 : i64} {
  func.func @ln2d_kernel(%arg0: i32, %arg1: memref<8x256xf32, #tpu.memory_space<vmem>>, %arg2: memref<8x1xf32, #tpu.memory_space<vmem>>, %arg3: memref<8x1xf32, #tpu.memory_space<vmem>>, %arg4: memref<8x256xf32, #tpu.memory_space<vmem>>) attributes {dimension_semantics = [#tpu.dimension_semantics<parallel>], iteration_bounds = array<i64: 1>, scalar_prefetch = 0 : i64, scratch_operands = 0 : i64, tpu.core_type = #tpu.core_type<tc>, window_params = [{transform_indices = @transform_0, window_bounds = array<i64: 8, 256>}, {transform_indices = @transform_1, window_bounds = array<i64: 8, 1>}, {transform_indices = @transform_2, window_bounds = array<i64: 8, 1>}, {transform_indices = @transform_3, window_bounds = array<i64: 8, 256>}]} {
    %c0 = arith.constant 0 : index
    %c0_0 = arith.constant 0 : index
    %0 = vector.load %arg1[%c0, %c0_0] : memref<8x256xf32, #tpu.memory_space<vmem>>, vector<8x256xf32>
    %cst = arith.constant dense<0.000000e+00> : vector<8xf32>
    %1 = vector.multi_reduction <add>, %0, %cst [1] : vector<8x256xf32> to vector<8xf32>
    %2 = vector.shape_cast %1 : vector<8xf32> to vector<8x1xf32>
    %cst_1 = arith.constant 3.906250e-03 : f32
    %3 = vector.broadcast %cst_1 : f32 to vector<8x1xf32>
    %4 = arith.mulf %2, %3 : vector<8x1xf32>
    %5 = vector.broadcast %4 : vector<8x1xf32> to vector<8x256xf32>
    %6 = arith.subf %0, %5 : vector<8x256xf32>
    %7 = arith.mulf %6, %6 : vector<8x256xf32>
    %cst_2 = arith.constant dense<0.000000e+00> : vector<8xf32>
    %8 = vector.multi_reduction <add>, %7, %cst_2 [1] : vector<8x256xf32> to vector<8xf32>
    %9 = vector.shape_cast %8 : vector<8xf32> to vector<8x1xf32>
    %cst_3 = arith.constant 3.906250e-03 : f32
    %10 = vector.broadcast %cst_3 : f32 to vector<8x1xf32>
    %11 = arith.mulf %9, %10 : vector<8x1xf32>
    %cst_4 = arith.constant 9.99999997E-7 : f32
    %12 = vector.broadcast %cst_4 : f32 to vector<8x1xf32>
    %13 = arith.addf %11, %12 : vector<8x1xf32>
    %14 = math.sqrt %13 : vector<8x1xf32>
    %cst_5 = arith.constant 1.000000e-03 : f32
    %15 = vector.broadcast %cst_5 : f32 to vector<8x1xf32>
    %16 = arith.maximumf %14, %15 : vector<8x1xf32>
    %cst_6 = arith.constant 1.000000e+00 : f32
    %17 = vector.broadcast %cst_6 : f32 to vector<8x1xf32>
    %18 = arith.divf %17, %16 : vector<8x1xf32>
    %c0_7 = arith.constant 0 : index
    %c0_8 = arith.constant 0 : index
    %19 = vector.load %arg2[%c0_7, %c0_8] : memref<8x1xf32, #tpu.memory_space<vmem>>, vector<8x1xf32>
    %c0_9 = arith.constant 0 : index
    %c0_10 = arith.constant 0 : index
    %20 = vector.load %arg3[%c0_9, %c0_10] : memref<8x1xf32, #tpu.memory_space<vmem>>, vector<8x1xf32>
    %21 = arith.mulf %19, %18 : vector<8x1xf32>
    %22 = arith.mulf %4, %21 : vector<8x1xf32>
    %23 = arith.subf %20, %22 : vector<8x1xf32>
    %24 = vector.broadcast %21 : vector<8x1xf32> to vector<8x256xf32>
    %25 = arith.mulf %0, %24 : vector<8x256xf32>
    %26 = vector.broadcast %23 : vector<8x1xf32> to vector<8x256xf32>
    %27 = arith.addf %25, %26 : vector<8x256xf32>
    %c0_11 = arith.constant 0 : index
    %c0_12 = arith.constant 0 : index
    %28 = vector.load %arg4[%c0_11, %c0_12] : memref<8x256xf32, #tpu.memory_space<vmem>>, vector<8x256xf32>
    tpu.vector_store %arg4[%c0_11, %c0_12], %27 {strides = array<i32>} : memref<8x256xf32, #tpu.memory_space<vmem>>, vector<8x256xf32>,
    return
  }
  func.func @transform_0(%arg0: i32) -> (i32, i32) {
    %c0_i32 = arith.constant 0 : i32
    %c0_i32_0 = arith.constant 0 : i32
    return %arg0, %c0_i32 : i32, i32
  }
  func.func @transform_1(%arg0: i32) -> (i32, i32) {
    %c0_i32 = arith.constant 0 : i32
    %c0_i32_0 = arith.constant 0 : i32
    return %arg0, %c0_i32 : i32, i32
  }
  func.func @transform_2(%arg0: i32) -> (i32, i32) {
    %c0_i32 = arith.constant 0 : i32
    %c0_i32_0 = arith.constant 0 : i32
    return %arg0, %c0_i32 : i32, i32
  }
  func.func @transform_3(%arg0: i32) -> (i32, i32) {
    %c0_i32 = arith.constant 0 : i32
    %c0_i32_0 = arith.constant 0 : i32
    return %arg0, %c0_i32 : i32, i32
  }
}

</mosaic_0001>

<bundles_post_ra>
// kernel: tpu_custom_call.1
= control target key start
LH: loop header
LB: loop body
LE: loop exit
PB: predicated region body
PF: predicated region fallthrough
CT: control target
= control target key end

     0   :  { %s166_s0 = inlined_call_operand.vmem [shape: f32[8,256], index: 0, kind: input, shape index: {}]   ;;  %s167_s1 = inlined_call_operand.vmem [shape: f32[8,1], index: 1, kind: input, shape index: {}]   ;;  %s168_s2 = inlined_call_operand.vmem [shape: f32[8,1], index: 2, kind: input, shape index: {}]   ;;  %s169_s3 = inlined_call_operand.hbm [shape: f32[8,256], index: 3, kind: output, shape index: {}]  }
   0x1   :  { %v15_v0 = vld [vmem:[%s166_s0] sm:$0xff]  ;;  %v16_v1 = vld [vmem:[%s166_s0 + $0x8] sm:$0xff] }
   0x2   :  { %8 = vsyncpa [#allocation3], 0  ;;  %v17_v2 = vadd.f32 %v16_v1, %v15_v0  ;;  %v129_v10 = vmov 0   ;;  %v58_v33 = vld [vmem:[%s167_s1] sm:$0xff]  ;;  %s130_s19 = smov [#allocation2]   ;;  %s86_s1 = sshll.u32 %s169_s3, 4  ;;  %s87_s1 = int_to_ptr.hbm [resolvable:$true] %s86_s1 }
   0x3   :  { %97 = vset.pattern.permute.xlu1 %v129_v10  ;;  %98 = vset.pattern.permute.xlu0 %v129_v10  ;;  %v59_v38 = vld [vmem:[%s168_s2] sm:$0xff]  ;;  %s84_s20 = sshll.u32 %s130_s19, 4  ;;  %s85_s20 = int_to_ptr.vmem [resolvable:$true] %s84_s20 }
   0x4   :  { %18 = vadd.xlane.f32.xlu0 %v17_v2 }
  0x77   :  { %v19_v3 = vpop.xlane.xlu0 %18 }
  0x78   :  { %v20_v4 = vmul.f32 0.00390625, %v19_v3 }
  0x7a   :  { %v21_v5 = vsub.f32 %v15_v0, %v20_v4  ;;  %v22_v6 = vsub.f32 %v16_v1, %v20_v4 }
  0x7c   :  { %v23_v7 = vmul.f32 %v21_v5, %v21_v5  ;;  %v24_v8 = vmul.f32 %v22_v6, %v22_v6 }
  0x7e   :  { %v25_v9 = vadd.f32 %v24_v8, %v23_v7 }
  0x80   :  { %26 = vadd.xlane.f32.xlu0 %v25_v9 }
  0xf3   :  { %v27_v11 = vpop.xlane.xlu0 %26 }
  0xf4   :  { %v28_v12 = vmul.f32 0.00390625, %v27_v11 }
  0xf6   :  { %v29_v13 = vadd.f32 1e-06, %v28_v12 }
  0xf8   :  { %99 = vrsqrt.f32 %v29_v13  ;;  %vm37_vm0 = vcmp.eq.f32.partialorder %v29_v13, inf  ;;  %v40_v21 = vand.u32 2147483648, %v29_v13  ;;  %vm39_vm1 = vcmp.eq.f32.partialorder %v29_v13, 0.0 }
  0xfe   :  { %v100_v14 = vpop.eup %99 }
  0xff   :  { %v31_v15 = vmul.f32 %v100_v14, %v29_v13 }
 0x101   :  { %v32_v16 = vmul.f32 %v100_v14, %v31_v15 }
 0x103   :  { %v33_v17 = vmul.f32 0.5, %v32_v16 }
 0x105   :  { %v34_v18 = vsub.f32 1.5, %v33_v17 }
 0x107   :  { %v35_v19 = vmul.f32 %v100_v14, %v34_v18 }
 0x109   :  { %v36_v20 = vmul.f32 %v35_v19, %v29_v13 }
 0x10b   :  { %v38_v22 = vsel %vm37_vm0, %v29_v13, %v36_v20 }
 0x10c   :  { %v41_v23 = vsel %vm39_vm1, %v40_v21, %v38_v22 }
 0x10d   :  { %v42_v24 = vmax.f32 %v41_v23, 0.001 }
 0x10f   :  { %101 = vrcp.f32 %v42_v24  ;;  %v54_v28 = vand.u32 2147483648, %v42_v24  ;;  %v52_v30 = vand.u32 2147483647, %v42_v24  ;;  %vm48_vm3 = vweird.f32 %v42_v24 }
 0x111   :  { %v55_v32 = vor.u32 1.1754944e-38, %v54_v28  ;;  %vm53_vm5 = vcmp.eq.f32.partialorder %v52_v30, 8.507059e+37 }
 0x115   :  { %v102_v25 = vpop.eup %101 }
 0x116   :  { %v44_v26 = vmul.f32 %v102_v25, %v42_v24  ;;  %vm49_vm2 = vweird.f32 %v102_v25 }
 0x117   :  { %vm50_vm4 = vmor %vm48_vm3, %vm49_vm2 }
 0x118   :  { %v45_v27 = vsub.f32 1.0, %v44_v26 }
 0x11a   :  { %v46_v29 = vmul.f32 %v102_v25, %v45_v27 }
 0x11c   :  { %v47_v31 = vadd.f32 %v102_v25, %v46_v29 }
 0x11e   :  { %v51_v34 = vsel %vm50_vm4, %v102_v25, %v47_v31 }
 0x11f   :  { %v56_v35 = vsel %vm53_vm5, %v55_v32, %v51_v34 }
 0x120   :  { %v60_v36 = vmul.f32 %v58_v33, %v56_v35 }
 0x122   :  { %65 = vperm.xlu1 %97, %v60_v36   ;;  %v61_v37 = vmul.f32 %v60_v36, %v20_v4 }
 0x124   :  { %v62_v39 = vsub.f32 %v59_v38, %v61_v37 }
 0x12a   :  { %72 = vperm.xlu1 %97, %v62_v39  }
 0x194   :  { %v66_v40 = vpop.permute.xlu1 %65 }
 0x195   :  { %v68_v41 = vmul.f32 %v66_v40, %v15_v0  ;;  %v69_v42 = vmul.f32 %v66_v40, %v16_v1 }
 0x19c   :  { %v73_v43 = vpop.permute.xlu1 %72 }
 0x19d   :  { %v75_v44 = vadd.f32 %v73_v43, %v68_v41  ;;  %v76_v45 = vadd.f32 %v73_v43, %v69_v42 }
 0x19f   :  { %77 = vst [vmem:[#allocation2] sm:$0xff] %v75_v44 }
 0x1a0   :  { %78 = vst [vmem:[#allocation2 + $0x8] sm:$0xff] %v76_v45 }
 0x1a1   :  { %89 = dma.vmem_to_hbm [thread:$0]  %s85_s20, 256, %s87_s1, [#allocation3]  }
 0x1a2   :  { %127 = dma.done.wait [#allocation3], 256  }
 0x1a3   :  { %128 = vsyncadd [#allocation3], 4294967040 }
 0x1a4   :  { %94 = vsyncpa [#allocation3], 1 }

</bundles_post_ra>
